<compile_context>
chip_gen: v5e
topology: v5e:2x2
jax: 0.10.0
libtpu: 0.0.40
codegen_flags: <defaults>
</compile_context>

<pallas_src>
import jax
import jax.numpy as jnp
from jax import lax
from jax.experimental import pallas as pl
from jax.experimental.pallas import tpu as pltpu


def _round_up(a, b):
    return ((a + b - 1) // b) * b


def _block_diag(mat, g):
    """(F, C) -> (g*F, g*C) block-diagonal copy (built once in the wrapper)."""
    f, c = mat.shape
    eye = jnp.eye(g, dtype=mat.dtype)
    return (eye[:, None, :, None] * mat[None, :, None, :]).reshape(g * f, g * c)


def _make_kernel(*, C, F, OUT_W, HW, THW, g, n_groups, hw_masked):
    inv_hw = 1.0 / float(HW)

    def kernel(x_ref, wbd_ref, bbd_ref, w1_ref, b1_ref, clsp_ref, w2p_ref, bp_ref,
               out_ref, feats_ref):
        h = pl.program_id(1)
        n_h = pl.num_programs(1)

        @pl.when(h == 0)
        def _init():
            feats_ref[...] = jnp.zeros_like(feats_ref)

        # Pooling row (1/HW on valid columns of this HW chunk, 0 on padded columns).
        # Hoisted out of the group loop; the HW reduction rides the MXU.
        if hw_masked:
            col = lax.broadcasted_iota(jnp.int32, (1, THW), 1)
            pool_row = jnp.where(h * THW + col < HW, inv_hw, 0.0).astype(jnp.float32)
        else:
            pool_row = jnp.full((1, THW), inv_hw, dtype=jnp.float32)

        wbd = wbd_ref[...]          # (g*F, g*C) block-diagonal stem weight
        bbd = bbd_ref[...]          # (g*F, 1) tiled stem bias

        # Grouped, statically unrolled stem: one well-shaped matmul per g images.
        for i in range(n_groups):
            xg = x_ref[pl.ds(i * g * C, g * C), :]                       # (g*C, THW)
            yg = jnp.dot(wbd, xg, preferred_element_type=jnp.float32)    # (g*F, THW)
            yg = jnp.maximum(yg + bbd, 0.0)
            # grouped partial pool for g images at once: (1,THW).(g*F,THW)^T -> (1,g*F)
            pooled = lax.dot_general(pool_row, yg, (((1,), (1,)), ((), ())),
                                     preferred_element_type=jnp.float32)
            feats_ref[pl.ds(i, 1), :] += pooled

        # Heads once per batch block, after the last HW chunk.  Output is a single
        # lane-dense (n_groups, g*OUT_W) slab: per image, [:NC]=logits, [NC]=weight.
        @pl.when(h == n_h - 1)
        def _heads():
            feats = feats_ref[...]                                       # (n_groups, g*F)
            w1 = w1_ref[...]
            b1 = b1_ref[...]
            clsp = clsp_ref[...]
            w2p = w2p_ref[...]
            bp = bp_ref[...]
            for j in range(g):
                fj = feats[:, j * F:(j + 1) * F]                         # (n_groups, F)
                hj = jnp.maximum(
                    jnp.dot(fj, w1, preferred_element_type=jnp.float32) + b1, 0.0)
                oj = (jnp.dot(fj, clsp, preferred_element_type=jnp.float32)
                      + jnp.dot(hj, w2p, preferred_element_type=jnp.float32)
                      + bp)                                              # (n_groups, OUT_W)
                out_ref[:, pl.ds(j * OUT_W, OUT_W)] = oj

    return kernel


def multitask_forward(x_nchw, params, *, lane_chunk=512):
    B, C, H, W = x_nchw.shape
    HW = H * W
    f32 = jnp.float32

    conv_w = params["conv_w"].astype(f32)               # (C, F)
    conv_b = params["conv_b"].reshape(-1).astype(f32)   # (F,)
    cls_w = params["cls_w"].astype(f32)                 # (F, NC)
    cls_b = params["cls_b"].reshape(-1).astype(f32)     # (NC,)
    reg_w1 = params["reg_w1"].astype(f32)               # (F, HID)
    reg_b1 = params["reg_b1"].reshape(-1).astype(f32)   # (HID,)
    reg_w2 = params["reg_w2"].astype(f32)               # (HID, 1)
    reg_b2 = params["reg_b2"].reshape(-1).astype(f32)   # (1,)

    F = conv_w.shape[1]
    NC = cls_w.shape[1]
    HID = reg_w1.shape[1]

    # ---- batch tiling / image grouping -------------------------------------
    # Multi-block tiling needs TB % 64 == 0 (so the grouped output block keeps its
    # sublane dim a multiple of 8); otherwise run a single padded block.
    if B <= 8:
        TB, g, Bp = B, B, B
    else:
        g = 8
        bp8 = _round_up(B, 8)
        if bp8 % 64 == 0:
            TB = min(128, max(64, _round_up(bp8 // 2, 64)))   # >=2 blocks when possible
            TB = min(TB, bp8)
            Bp = _round_up(bp8, TB)
        else:
            TB, Bp = bp8, bp8
    n_groups = TB // g
    num_b_blocks = Bp // TB

    # ---- HW chunking (keeps VMEM bounded for large images) ------------------
    if HW <= lane_chunk:
        THW, HWp = HW, HW
    else:
        THW = lane_chunk                      # multiple of 128
        HWp = _round_up(HW, THW)
    n_hw = HWp // THW
    hw_masked = HWp != HW

    # ---- input layout: NCHW -> dense (Bp*C, HWp) view -----------------------
    x = x_nchw.reshape(B, C, HW).astype(f32)
    if (Bp != B) or (HWp != HW):
        x = jnp.pad(x, ((0, Bp - B), (0, 0), (0, HWp - HW)))
    x = x.reshape(Bp * C, HWp)

    # ---- parameter packing (tiny, done once per call) -----------------------
    conv_w_t = conv_w.T                                   # (F, C)
    wbd = _block_diag(conv_w_t, g)                        # (g*F, g*C)
    bbd = jnp.tile(conv_b, g).reshape(g * F, 1)           # (g*F, 1)
    OUT_W = _round_up(NC + 1, 128)
    cls_w_pad = jnp.zeros((F, OUT_W), f32).at[:, :NC].set(cls_w)
    w2_pad = jnp.zeros((HID, OUT_W), f32).at[:, NC].set(reg_w2[:, 0])
    b_pad = (jnp.zeros((1, OUT_W), f32)
             .at[0, :NC].set(cls_b)
             .at[0, NC].set(reg_b2[0]))
    b1_row = reg_b1.reshape(1, HID)

    kernel = _make_kernel(C=C, F=F, OUT_W=OUT_W, HW=HW, THW=THW,
                          g=g, n_groups=n_groups, hw_masked=hw_masked)

    def _rep(a):
        nd = a.ndim
        return pl.BlockSpec(a.shape, lambda b, h, _nd=nd: (0,) * _nd)

    flops = (2 * Bp * C * F * HWp                       # grouped stem
             + 2 * Bp * F * HWp                         # MXU pooling
             + Bp * (2 * F * HID + 2 * F * OUT_W + 2 * HID * OUT_W))
    bytes_accessed = 4 * (Bp * C * HWp                  # padded x actually streamed
                          + (g * F) * (g * C) + g * F
                          + F * HID + HID + F * OUT_W + HID * OUT_W + OUT_W
                          + Bp * OUT_W)

    out = pl.pallas_call(
        kernel,
        grid_spec=pltpu.PrefetchScalarGridSpec(
            num_scalar_prefetch=0,
            grid=(num_b_blocks, n_hw),
            in_specs=[
                pl.BlockSpec((TB * C, THW), lambda b, h: (b, h)),   # dense x block
                _rep(wbd), _rep(bbd),
                _rep(reg_w1), _rep(b1_row),
                _rep(cls_w_pad), _rep(w2_pad), _rep(b_pad),
            ],
            out_specs=pl.BlockSpec((n_groups, g * OUT_W), lambda b, h: (b, 0)),
            scratch_shapes=[pltpu.VMEM((n_groups, g * F), jnp.float32)],
        ),
        out_shape=jax.ShapeDtypeStruct((Bp // g, g * OUT_W), jnp.float32),
        compiler_params=pltpu.CompilerParams(
            dimension_semantics=("parallel", "arbitrary"),
            vmem_limit_bytes=32 * 1024 * 1024),
        cost_estimate=pl.CostEstimate(flops=flops, transcendentals=0,
                                      bytes_accessed=bytes_accessed),
    )(x, wbd, bbd, reg_w1, b1_row, cls_w_pad, w2_pad, b_pad)

    out = out.reshape(Bp, OUT_W)          # free row-major un-grouping
    class_logits = out[:B, :NC]           # (B, num_classes)
    weight_pred = out[:B, NC]             # (B,)  -- matches .squeeze(1)
    return class_logits, weight_pred


def init_params(key, c_in=3, num_features=128, num_classes=8, hidden=128):
    ks = jax.random.split(key, 8)

    def lin(kw, fan_in, fan_out):
        return jax.random.normal(kw, (fan_in, fan_out), jnp.float32) / jnp.sqrt(float(fan_in))

    return dict(
        conv_w=lin(ks[0], c_in, num_features),
        conv_b=0.1 * jax.random.normal(ks[1], (num_features,), jnp.float32),
        cls_w=lin(ks[2], num_features, num_classes),
        cls_b=0.1 * jax.random.normal(ks[3], (num_classes,), jnp.float32),
        reg_w1=lin(ks[4], num_features, hidden),
        reg_b1=0.1 * jax.random.normal(ks[5], (hidden,), jnp.float32),
        reg_w2=lin(ks[6], hidden, 1),
        reg_b2=0.1 * jax.random.normal(ks[7], (1,), jnp.float32),
    )


def reference_forward(x_nchw, params):
    B, C, H, W = x_nchw.shape
    x = x_nchw.reshape(B, C, H * W).astype(jnp.float32)
    y = jnp.einsum("bcq,cf->bqf", x, params["conv_w"]) + params["conv_b"][None, None, :]
    y = jnp.maximum(y, 0.0)
    feats = jnp.mean(y, axis=1)
    logits = feats @ params["cls_w"] + params["cls_b"][None, :]
    h = jnp.maximum(feats @ params["reg_w1"] + params["reg_b1"][None, :], 0.0)
    w = h @ params["reg_w2"] + params["reg_b2"][None, :]
    return logits, w[:, 0]


if __name__ == "__main__":
    def run_case(case_id, B, C, H, W, num_classes, lane_chunk):
        kx, kp = jax.random.split(jax.random.fold_in(jax.random.PRNGKey(0), case_id))
        x = jax.random.normal(kx, (B, C, H, W), jnp.float32)
        params = init_params(kp, c_in=C, num_features=128,
                             num_classes=num_classes, hidden=128)
        logits, wpred = multitask_forward(x, params, lane_chunk=lane_chunk)
        jax.block_until_ready((logits, wpred))
        ref_logits, ref_w = reference_forward(x, params)
        assert logits.shape == (B, num_classes)
        assert wpred.shape == (B,)
        assert jnp.allclose(logits, ref_logits, atol=1e-3, rtol=1e-3), f"case {case_id}: logits"
        assert jnp.allclose(wpred, ref_w, atol=1e-3, rtol=1e-3), f"case {case_id}: weight"

    # primary small case: batch=2, 3x16x16 (single HW chunk, single batch block)
    run_case(0, 2, 3, 16, 16, 8, 512)
    # ragged HW -> chunked grid with masked pooling row; odd batch size
    run_case(1, 3, 3, 20, 20, 8, 256)
    # multiple "parallel" batch blocks, 8-image groups, multi-group head loop
    run_case(2, 128, 3, 8, 8, 8, 512)

    print("KERNEL_OK")
</pallas_src>

<mosaic_0001>
module attributes {stable_mosaic.version = 11 : i64} {
  func.func @kernel(%arg0: i32, %arg1: i32, %arg2: memref<6x256xf32, #tpu.memory_space<vmem>>, %arg3: memref<256x6xf32, #tpu.memory_space<vmem>>, %arg4: memref<256x1xf32, #tpu.memory_space<vmem>>, %arg5: memref<128x128xf32, #tpu.memory_space<vmem>>, %arg6: memref<1x128xf32, #tpu.memory_space<vmem>>, %arg7: memref<128x128xf32, #tpu.memory_space<vmem>>, %arg8: memref<128x128xf32, #tpu.memory_space<vmem>>, %arg9: memref<1x128xf32, #tpu.memory_space<vmem>>, %arg10: memref<1x256xf32, #tpu.memory_space<vmem>>, %arg11: memref<1x256xf32, #tpu.memory_space<vmem>>) attributes {dimension_semantics = [#tpu.dimension_semantics<parallel>, #tpu.dimension_semantics<arbitrary>], iteration_bounds = array<i64: 1, 1>, scalar_prefetch = 0 : i64, scratch_operands = 1 : i64, tpu.core_type = #tpu.core_type<tc>, window_params = [{transform_indices = @transform_0, window_bounds = array<i64: 6, 256>}, {pipeline_mode = #tpu.pipeline_mode<synchronous>, transform_indices = @transform_1, window_bounds = array<i64: 256, 6>}, {pipeline_mode = #tpu.pipeline_mode<synchronous>, transform_indices = @transform_2, window_bounds = array<i64: 256, 1>}, {pipeline_mode = #tpu.pipeline_mode<synchronous>, transform_indices = @transform_3, window_bounds = array<i64: 128, 128>}, {pipeline_mode = #tpu.pipeline_mode<synchronous>, transform_indices = @transform_4, window_bounds = array<i64: 1, 128>}, {pipeline_mode = #tpu.pipeline_mode<synchronous>, transform_indices = @transform_5, window_bounds = array<i64: 128, 128>}, {pipeline_mode = #tpu.pipeline_mode<synchronous>, transform_indices = @transform_6, window_bounds = array<i64: 128, 128>}, {pipeline_mode = #tpu.pipeline_mode<synchronous>, transform_indices = @transform_7, window_bounds = array<i64: 1, 128>}, {transform_indices = @transform_8, window_bounds = array<i64: 1, 256>}]} {
    %c0_i32 = arith.constant 0 : i32
    %0 = arith.cmpi eq, %arg1, %c0_i32 : i32
    %1 = arith.extui %0 : i1 to i32
    %c0_i32_0 = arith.constant 0 : i32
    %2 = arith.cmpi ne, %1, %c0_i32_0 : i32
    scf.if %2 {
      %cst_15 = arith.constant 0.000000e+00 : f32
      %19 = vector.broadcast %cst_15 : f32 to vector<1x256xf32>
      %c0_16 = arith.constant 0 : index
      %c0_17 = arith.constant 0 : index
      %20 = vector.load %arg11[%c0_16, %c0_17] : memref<1x256xf32, #tpu.memory_space<vmem>>, vector<1x256xf32>
      tpu.vector_store %arg11[%c0_16, %c0_17], %19 {strides = array<i32>} : memref<1x256xf32, #tpu.memory_space<vmem>>, vector<1x256xf32>,
    } else {
    }
    %cst = arith.constant 3.906250e-03 : f32
    %3 = vector.broadcast %cst : f32 to vector<1x256xf32>
    %c0 = arith.constant 0 : index
    %c0_1 = arith.constant 0 : index
    %4 = vector.load %arg3[%c0, %c0_1] : memref<256x6xf32, #tpu.memory_space<vmem>>, vector<256x6xf32>
    %c0_2 = arith.constant 0 : index
    %c0_3 = arith.constant 0 : index
    %5 = vector.load %arg4[%c0_2, %c0_3] : memref<256x1xf32, #tpu.memory_space<vmem>>, vector<256x1xf32>
    %c0_4 = arith.constant 0 : index
    %c0_5 = arith.constant 0 : index
    %6 = vector.load %arg2[%c0_4, %c0_5] : memref<6x256xf32, #tpu.memory_space<vmem>>, vector<6x256xf32>
    %cst_6 = arith.constant dense<0.000000e+00> : vector<256x256xf32>
    %7 = tpu.matmul %4, %6, %cst_6 {dimension_numbers = #tpu.dot_dimension_numbers<[1], [0], [0], [1], [0, 0, 1, 1], [], []>} : vector<256x6xf32>, vector<6x256xf32>, vector<256x256xf32> -> vector<256x256xf32>
    %8 = vector.broadcast %5 : vector<256x1xf32> to vector<256x256xf32>
    %9 = arith.addf %7, %8 : vector<256x256xf32>
    %cst_7 = arith.constant 0.000000e+00 : f32
    %10 = vector.broadcast %cst_7 : f32 to vector<256x256xf32>
    %11 = arith.maximumf %9, %10 : vector<256x256xf32>
    %cst_8 = arith.constant dense<0.000000e+00> : vector<1x256xf32>
    %12 = tpu.matmul %3, %11, %cst_8 {dimension_numbers = #tpu.dot_dimension_numbers<[1], [1], [0], [0], [0, 0, 1, 0], [], []>} : vector<1x256xf32>, vector<256x256xf32>, vector<1x256xf32> -> vector<1x256xf32>
    %c0_9 = arith.constant 0 : index
    %c0_10 = arith.constant 0 : index
    %13 = vector.load %arg11[%c0_9, %c0_10] : memref<1x256xf32, #tpu.memory_space<vmem>>, vector<1x256xf32>
    %14 = arith.addf %13, %12 : vector<1x256xf32>
    %c0_11 = arith.constant 0 : index
    %c0_12 = arith.constant 0 : index
    %15 = vector.load %arg11[%c0_11, %c0_12] : memref<1x256xf32, #tpu.memory_space<vmem>>, vector<1x256xf32>
    tpu.vector_store %arg11[%c0_11, %c0_12], %14 {strides = array<i32>} : memref<1x256xf32, #tpu.memory_space<vmem>>, vector<1x256xf32>,
    %c0_i32_13 = arith.constant 0 : i32
    %16 = arith.cmpi eq, %arg1, %c0_i32_13 : i32
    %17 = arith.extui %16 : i1 to i32
    %c0_i32_14 = arith.constant 0 : i32
    %18 = arith.cmpi ne, %17, %c0_i32_14 : i32
    scf.if %18 {
      %c0_15 = arith.constant 0 : index
      %c0_16 = arith.constant 0 : index
      %19 = vector.load %arg11[%c0_15, %c0_16] : memref<1x256xf32, #tpu.memory_space<vmem>>, vector<1x256xf32>
      %c0_17 = arith.constant 0 : index
      %c0_18 = arith.constant 0 : index
      %20 = vector.load %arg5[%c0_17, %c0_18] : memref<128x128xf32, #tpu.memory_space<vmem>>, vector<128x128xf32>
      %c0_19 = arith.constant 0 : index
      %c0_20 = arith.constant 0 : index
      %21 = vector.load %arg6[%c0_19, %c0_20] : memref<1x128xf32, #tpu.memory_space<vmem>>, vector<1x128xf32>
      %c0_21 = arith.constant 0 : index
      %c0_22 = arith.constant 0 : index
      %22 = vector.load %arg7[%c0_21, %c0_22] : memref<128x128xf32, #tpu.memory_space<vmem>>, vector<128x128xf32>
      %c0_23 = arith.constant 0 : index
      %c0_24 = arith.constant 0 : index
      %23 = vector.load %arg8[%c0_23, %c0_24] : memref<128x128xf32, #tpu.memory_space<vmem>>, vector<128x128xf32>
      %c0_25 = arith.constant 0 : index
      %c0_26 = arith.constant 0 : index
      %24 = vector.load %arg9[%c0_25, %c0_26] : memref<1x128xf32, #tpu.memory_space<vmem>>, vector<1x128xf32>
      %25 = vector.extract_strided_slice %19 {offsets = [0, 0], sizes = [1, 128], strides = [1, 1]} : vector<1x256xf32> to vector<1x128xf32>
      %cst_27 = arith.constant dense<0.000000e+00> : vector<1x128xf32>
      %26 = tpu.matmul %25, %20, %cst_27 {dimension_numbers = #tpu.dot_dimension_numbers<[1], [0], [0], [1], [0, 0, 1, 1], [], []>} : vector<1x128xf32>, vector<128x128xf32>, vector<1x128xf32> -> vector<1x128xf32>
      %27 = arith.addf %26, %21 : vector<1x128xf32>
      %cst_28 = arith.constant 0.000000e+00 : f32
      %28 = vector.broadcast %cst_28 : f32 to vector<1x128xf32>
      %29 = arith.maximumf %27, %28 : vector<1x128xf32>
      %cst_29 = arith.constant dense<0.000000e+00> : vector<1x128xf32>
      %30 = tpu.matmul %25, %22, %cst_29 {dimension_numbers = #tpu.dot_dimension_numbers<[1], [0], [0], [1], [0, 0, 1, 1], [], []>} : vector<1x128xf32>, vector<128x128xf32>, vector<1x128xf32> -> vector<1x128xf32>
      %cst_30 = arith.constant dense<0.000000e+00> : vector<1x128xf32>
      %31 = tpu.matmul %29, %23, %cst_30 {dimension_numbers = #tpu.dot_dimension_numbers<[1], [0], [0], [1], [0, 0, 1, 1], [], []>} : vector<1x128xf32>, vector<128x128xf32>, vector<1x128xf32> -> vector<1x128xf32>
      %32 = arith.addf %30, %31 : vector<1x128xf32>
      %33 = arith.addf %32, %24 : vector<1x128xf32>
      %c0_31 = arith.constant 0 : index
      %c0_32 = arith.constant 0 : index
      %34 = vector.load %arg10[%c0_31, %c0_32] : memref<1x256xf32, #tpu.memory_space<vmem>>, vector<1x128xf32>
      tpu.vector_store %arg10[%c0_31, %c0_32], %33 {strides = array<i32>} : memref<1x256xf32, #tpu.memory_space<vmem>>, vector<1x128xf32>,
      %35 = vector.extract_strided_slice %19 {offsets = [0, 128], sizes = [1, 128], strides = [1, 1]} : vector<1x256xf32> to vector<1x128xf32>
      %cst_33 = arith.constant dense<0.000000e+00> : vector<1x128xf32>
      %36 = tpu.matmul %35, %20, %cst_33 {dimension_numbers = #tpu.dot_dimension_numbers<[1], [0], [0], [1], [0, 0, 1, 1], [], []>} : vector<1x128xf32>, vector<128x128xf32>, vector<1x128xf32> -> vector<1x128xf32>
      %37 = arith.addf %36, %21 : vector<1x128xf32>
      %cst_34 = arith.constant 0.000000e+00 : f32
      %38 = vector.broadcast %cst_34 : f32 to vector<1x128xf32>
      %39 = arith.maximumf %37, %38 : vector<1x128xf32>
      %cst_35 = arith.constant dense<0.000000e+00> : vector<1x128xf32>
      %40 = tpu.matmul %35, %22, %cst_35 {dimension_numbers = #tpu.dot_dimension_numbers<[1], [0], [0], [1], [0, 0, 1, 1], [], []>} : vector<1x128xf32>, vector<128x128xf32>, vector<1x128xf32> -> vector<1x128xf32>
      %cst_36 = arith.constant dense<0.000000e+00> : vector<1x128xf32>
      %41 = tpu.matmul %39, %23, %cst_36 {dimension_numbers = #tpu.dot_dimension_numbers<[1], [0], [0], [1], [0, 0, 1, 1], [], []>} : vector<1x128xf32>, vector<128x128xf32>, vector<1x128xf32> -> vector<1x128xf32>
      %42 = arith.addf %40, %41 : vector<1x128xf32>
      %43 = arith.addf %42, %24 : vector<1x128xf32>
      %c0_37 = arith.constant 0 : index
      %c128 = arith.constant 128 : index
      %44 = vector.load %arg10[%c0_37, %c128] : memref<1x256xf32, #tpu.memory_space<vmem>>, vector<1x128xf32>
      tpu.vector_store %arg10[%c0_37, %c128], %43 {strides = array<i32>} : memref<1x256xf32, #tpu.memory_space<vmem>>, vector<1x128xf32>,
    } else {
    }
    return
  }
  func.func @transform_0(%arg0: i32, %arg1: i32) -> (i32, i32) {
    %c0_i32 = arith.constant 0 : i32
    return %arg0, %arg1 : i32, i32
  }
  func.func @transform_1(%arg0: i32, %arg1: i32) -> (i32, i32) {
    %c0_i32 = arith.constant 0 : i32
    %c0_i32_0 = arith.constant 0 : i32
    %c0_i32_1 = arith.constant 0 : i32
    return %c0_i32, %c0_i32_0 : i32, i32
  }
  func.func @transform_2(%arg0: i32, %arg1: i32) -> (i32, i32) {
    %c0_i32 = arith.constant 0 : i32
    %c0_i32_0 = arith.constant 0 : i32
    %c0_i32_1 = arith.constant 0 : i32
    return %c0_i32, %c0_i32_0 : i32, i32
  }
  func.func @transform_3(%arg0: i32, %arg1: i32) -> (i32, i32) {
    %c0_i32 = arith.constant 0 : i32
    %c0_i32_0 = arith.constant 0 : i32
    %c0_i32_1 = arith.constant 0 : i32
    return %c0_i32, %c0_i32_0 : i32, i32
  }
  func.func @transform_4(%arg0: i32, %arg1: i32) -> (i32, i32) {
    %c0_i32 = arith.constant 0 : i32
    %c0_i32_0 = arith.constant 0 : i32
    %c0_i32_1 = arith.constant 0 : i32
    return %c0_i32, %c0_i32_0 : i32, i32
  }
  func.func @transform_5(%arg0: i32, %arg1: i32) -> (i32, i32) {
    %c0_i32 = arith.constant 0 : i32
    %c0_i32_0 = arith.constant 0 : i32
    %c0_i32_1 = arith.constant 0 : i32
    return %c0_i32, %c0_i32_0 : i32, i32
  }
  func.func @transform_6(%arg0: i32, %arg1: i32) -> (i32, i32) {
    %c0_i32 = arith.constant 0 : i32
    %c0_i32_0 = arith.constant 0 : i32
    %c0_i32_1 = arith.constant 0 : i32
    return %c0_i32, %c0_i32_0 : i32, i32
  }
  func.func @transform_7(%arg0: i32, %arg1: i32) -> (i32, i32) {
    %c0_i32 = arith.constant 0 : i32
    %c0_i32_0 = arith.constant 0 : i32
    %c0_i32_1 = arith.constant 0 : i32
    return %c0_i32, %c0_i32_0 : i32, i32
  }
  func.func @transform_8(%arg0: i32, %arg1: i32) -> (i32, i32) {
    %c0_i32 = arith.constant 0 : i32
    %c0_i32_0 = arith.constant 0 : i32
    return %arg0, %c0_i32 : i32, i32
  }
}

</mosaic_0001>

<bundles_post_ra>
// kernel: tpu_custom_call.1
= control target key start
LH: loop header
LB: loop body
LE: loop exit
PB: predicated region body
PF: predicated region fallthrough
CT: control target
= control target key end

     0   :  { %vm362_vm0 = vcmask 1045504   ;;  %v1052_v2 = vmov 0   ;;  %vm265_vm1 = vcmask 48128   ;;  %s1833_s0 = inlined_call_operand.vmem [shape: f32[6,256], index: 0, kind: input, shape index: {}]   ;;  %s1834_s1 = inlined_call_operand.vmem [shape: f32[256,6], index: 1, kind: input, shape index: {}]   ;;  %s1835_s2 = inlined_call_operand.vmem [shape: f32[256,1], index: 2, kind: input, shape index: {}]   ;;  %s1836_s3 = inlined_call_operand.vmem [shape: f32[128,128], index: 3, kind: input, shape index: {}]   ;;  %s1837_s4 = inlined_call_operand.vmem [shape: f32[1,128], index: 4, kind: input, shape index: {}]   ;;  %s1838_s5 = inlined_call_operand.vmem [shape: f32[128,128], index: 5, kind: input, shape index: {}]   ;;  %s1839_s6 = inlined_call_operand.vmem [shape: f32[128,128], index: 6, kind: input, shape index: {}]   ;;  %s1840_s7 = inlined_call_operand.vmem [shape: f32[1,128], index: 7, kind: input, shape index: {}]   ;;  %s1841_s8 = inlined_call_operand.hbm [shape: f32[1,256], index: 8, kind: output, shape index: {}]  }
   0x1   :  { %v103_v0 = vld [vmem:[%s1833_s0] sm:$0x3f]  ;;  %v104_v1 = vld [vmem:[%s1833_s0 + $0x8] sm:$0x3f]  ;;  %1025 = vset.pattern.permute.xlu2 %v1052_v2  ;;  %1024 = vset.pattern.permute.xlu1 %v1052_v2  ;;  %v86_v3 = vld [vmem:[%s1835_s2 + $0x78] sm:$0xff] }
   0x2   :  { %v84_v4 = vld [vmem:[%s1835_s2 + $0x68] sm:$0xff]  ;;  %v83_v5 = vld [vmem:[%s1835_s2 + $0x60] sm:$0xff]  ;;  %1023 = vset.pattern.permute.xlu0 %v1052_v2  ;;  %953 = vmatpush.msk.msra.mxu0 %vm362_vm0, %v103_v0  ;;  %v85_v7 = vld [vmem:[%s1835_s2 + $0x70] sm:$0xff] }
   0x3   :  { %v39_v6 = vld [vmem:[%s1834_s1] sm:$0xff]  ;;  %986 = vmatpush.msk.msra.mxu1 %vm362_vm0, %v104_v1  ;;  %182 = vperm.xlu0 %1023, %v86_v3  }
   0x4   :  { %172 = vperm.xlu1 %1024, %v84_v4   ;;  %167 = vperm.xlu2 %1025, %v83_v5  }
   0x5   :  { %954 = vmatmul.msk.f32.vlgmr.msra.gmra.mxu0 %vm265_vm1, %v39_v6  ;;  %987 = vmatmul.msk.f32.vlgmr.msra.gmra.mxu1 %vm265_vm1, %v39_v6 }
   0x6   :  { %13 = vsyncpa [#allocation4], 0  ;;  %v102_v8 = vld [vmem:[%s1835_s2 + $0xf8] sm:$0xff]  ;;  %v101_v9 = vld [vmem:[%s1835_s2 + $0xf0] sm:$0xff]  ;;  %vm743_vm3 = vcmask 1040384   ;;  %s1055_s14 = smov [#allocation3]  }
   0x7   :  { %v40_v10 = vld [vmem:[%s1834_s1 + $0x8] sm:$0xff]  ;;  %v82_v11 = vld [vmem:[%s1835_s2 + $0x58] sm:$0xff]  ;;  %v81_v13 = vld [vmem:[%s1835_s2 + $0x50] sm:$0xff]  ;;  %s942_s15 = sshll.u32 %s1055_s14, 4  ;;  %s944_s0 = sshll.u32 %s1841_s8, 4  ;;  %s943_s15 = int_to_ptr.vmem [resolvable:$true] %s942_s15  ;;  %s945_s0 = int_to_ptr.hbm [resolvable:$true] %s944_s0 }
   0x8   :  { %v100_v12 = vld [vmem:[%s1835_s2 + $0xe8] sm:$0xff]  ;;  %v41_v14 = vld [vmem:[%s1834_s1 + $0x10] sm:$0xff]  ;;  %v99_v15 = vld [vmem:[%s1835_s2 + $0xe0] sm:$0xff] }
   0x9   :  { %v98_v16 = vld [vmem:[%s1835_s2 + $0xd8] sm:$0xff]  ;;  %v80_v17 = vld [vmem:[%s1835_s2 + $0x48] sm:$0xff]  ;;  %v79_v19 = vld [vmem:[%s1835_s2 + $0x40] sm:$0xff] }
   0xa   :  { %v42_v18 = vld [vmem:[%s1834_s1 + $0x18] sm:$0xff]  ;;  %v97_v20 = vld [vmem:[%s1835_s2 + $0xd0] sm:$0xff]  ;;  %v43_v22 = vld [vmem:[%s1834_s1 + $0x20] sm:$0xff] }
   0xb   :  { %177 = vperm.xlu0 %1023, %v85_v7   ;;  %v78_v21 = vld [vmem:[%s1835_s2 + $0x38] sm:$0xff]  ;;  %v96_v23 = vld [vmem:[%s1835_s2 + $0xc8] sm:$0xff]  ;;  %v95_v24 = vld [vmem:[%s1835_s2 + $0xc0] sm:$0xff] }
   0xc   :  { %262 = vperm.xlu1 %1024, %v102_v8   ;;  %257 = vperm.xlu2 %1025, %v101_v9   ;;  %v77_v25 = vld [vmem:[%s1835_s2 + $0x30] sm:$0xff]  ;;  %v44_v26 = vld [vmem:[%s1834_s1 + $0x28] sm:$0xff]  ;;  %v94_v28 = vld [vmem:[%s1835_s2 + $0xb8] sm:$0xff] }
   0xd   :  { %955 = vmatmul.msk.f32.gmra.mxu0 %vm265_vm1, %v40_v10  ;;  %988 = vmatmul.msk.f32.gmra.mxu1 %vm265_vm1, %v40_v10  ;;  %v76_v27 = vld [vmem:[%s1835_s2 + $0x28] sm:$0xff]  ;;  %v75_v29 = vld [vmem:[%s1835_s2 + $0x20] sm:$0xff]  ;;  %v45_v30 = vld [vmem:[%s1834_s1 + $0x30] sm:$0xff] }
   0xe   :  { %v93_v31 = vld [vmem:[%s1835_s2 + $0xb0] sm:$0xff]  ;;  %v92_v32 = vld [vmem:[%s1835_s2 + $0xa8] sm:$0xff]  ;;  %v74_v33 = vld [vmem:[%s1835_s2 + $0x18] sm:$0xff] }
   0xf   :  { %v46_v34 = vld [vmem:[%s1834_s1 + $0x38] sm:$0xff]  ;;  %v73_v35 = vld [vmem:[%s1835_s2 + $0x10] sm:$0xff]  ;;  %v91_v36 = vld [vmem:[%s1835_s2 + $0xa0] sm:$0xff] }
  0x10   :  { %v72_v37 = vld [vmem:[%s1835_s2 + $0x8] sm:$0xff]  ;;  %v47_v38 = vld [vmem:[%s1834_s1 + $0x40] sm:$0xff]  ;;  %v49_v41 = vld [vmem:[%s1834_s1 + $0x50] sm:$0xff] }
  0x11   :  { %v71_v39 = vld [vmem:[%s1835_s2] sm:$0xff]  ;;  %v48_v40 = vld [vmem:[%s1834_s1 + $0x48] sm:$0xff]  ;;  %v50_v42 = vld [vmem:[%s1834_s1 + $0x58] sm:$0xff] }
  0x12   :  { %v51_v43 = vld [vmem:[%s1834_s1 + $0x60] sm:$0xff]  ;;  %v52_v44 = vld [vmem:[%s1834_s1 + $0x68] sm:$0xff]  ;;  %v90_v45 = vld [vmem:[%s1835_s2 + $0x98] sm:$0xff] }
  0x13   :  { %162 = vperm.xlu0 %1023, %v82_v11   ;;  %v87_v46 = vld [vmem:[%s1835_s2 + $0x80] sm:$0xff]  ;;  %v53_v47 = vld [vmem:[%s1834_s1 + $0x70] sm:$0xff]  ;;  %v88_v48 = vld [vmem:[%s1835_s2 + $0x88] sm:$0xff] }
  0x14   :  { %252 = vperm.xlu1 %1024, %v100_v12   ;;  %157 = vperm.xlu2 %1025, %v81_v13   ;;  %v54_v49 = vld [vmem:[%s1834_s1 + $0x78] sm:$0xff]  ;;  %v55_v52 = vld [vmem:[%s1834_s1 + $0x80] sm:$0xff]  ;;  %v56_v55 = vld [vmem:[%s1834_s1 + $0x88] sm:$0xff] }
  0x15   :  { %956 = vmatmul.msk.f32.gmra.mxu0 %vm265_vm1, %v41_v14  ;;  %989 = vmatmul.msk.f32.gmra.mxu1 %vm265_vm1, %v41_v14  ;;  %v57_v58 = vld [vmem:[%s1834_s1 + $0x90] sm:$0xff]  ;;  %v58_v62 = vld [vmem:[%s1834_s1 + $0x98] sm:$0xff]  ;;  %v59_v1 = vld [vmem:[%s1834_s1 + $0xa0] sm:$0xff] }
  0x16   :  { %v89_v59 = vld [vmem:[%s1835_s2 + $0x90] sm:$0xff]  ;;  %v60_v4 = vld [vmem:[%s1834_s1 + $0xa8] sm:$0xff]  ;;  %v62_v10 = vld [vmem:[%s1834_s1 + $0xb8] sm:$0xff] }
  0x17   :  { %v61_v7 = vld [vmem:[%s1834_s1 + $0xb0] sm:$0xff]  ;;  %v63_v13 = vld [vmem:[%s1834_s1 + $0xc0] sm:$0xff] }
  0x1b   :  { %247 = vperm.xlu0 %1023, %v99_v15  }
  0x1c   :  { %242 = vperm.xlu2 %1025, %v98_v16   ;;  %152 = vperm.xlu1 %1024, %v80_v17   ;;  %v64_v16 = vld [vmem:[%s1834_s1 + $0xc8] sm:$0xff] }
  0x1d   :  { %957 = vmatmul.msk.f32.gmra.mxu0 %vm265_vm1, %v42_v18  ;;  %990 = vmatmul.msk.f32.gmra.mxu1 %vm265_vm1, %v42_v18 }
  0x23   :  { %147 = vperm.xlu0 %1023, %v79_v19   ;;  %v65_v19 = vld [vmem:[%s1834_s1 + $0xd0] sm:$0xff] }
  0x24   :  { %237 = vperm.xlu1 %1024, %v97_v20   ;;  %142 = vperm.xlu2 %1025, %v78_v21  }
  0x25   :  { %958 = vmatmul.msk.f32.gmra.mxu0 %vm265_vm1, %v43_v22  ;;  %991 = vmatmul.msk.f32.gmra.mxu1 %vm265_vm1, %v43_v22 }
  0x2b   :  { %232 = vperm.xlu0 %1023, %v96_v23  }
  0x2c   :  { %227 = vperm.xlu2 %1025, %v95_v24   ;;  %137 = vperm.xlu1 %1024, %v77_v25   ;;  %v66_v24 = vld [vmem:[%s1834_s1 + $0xd8] sm:$0xff] }
  0x2d   :  { %959 = vmatmul.msk.f32.gmra.mxu0 %vm265_vm1, %v44_v26  ;;  %992 = vmatmul.msk.f32.gmra.mxu1 %vm265_vm1, %v44_v26 }
  0x33   :  { %132 = vperm.xlu0 %1023, %v76_v27  }
  0x34   :  { %222 = vperm.xlu1 %1024, %v94_v28   ;;  %127 = vperm.xlu2 %1025, %v75_v29   ;;  %v67_v29 = vld [vmem:[%s1834_s1 + $0xe0] sm:$0xff] }
  0x35   :  { %960 = vmatmul.msk.f32.gmra.mxu0 %vm265_vm1, %v45_v30  ;;  %993 = vmatmul.msk.f32.gmra.mxu1 %vm265_vm1, %v45_v30 }
  0x3b   :  { %217 = vperm.xlu0 %1023, %v93_v31  }
  0x3c   :  { %212 = vperm.xlu2 %1025, %v92_v32   ;;  %122 = vperm.xlu1 %1024, %v74_v33  }
  0x3d   :  { %961 = vmatmul.msk.f32.gmra.mxu0 %vm265_vm1, %v46_v34  ;;  %994 = vmatmul.msk.f32.gmra.mxu1 %vm265_vm1, %v46_v34  ;;  %v68_v34 = vld [vmem:[%s1834_s1 + $0xe8] sm:$0xff] }
  0x43   :  { %117 = vperm.xlu0 %1023, %v73_v35  }
  0x44   :  { %207 = vperm.xlu1 %1024, %v91_v36   ;;  %112 = vperm.xlu2 %1025, %v72_v37  }
  0x45   :  { %962 = vmatmul.msk.f32.gmra.mxu0 %vm265_vm1, %v47_v38  ;;  %995 = vmatmul.msk.f32.gmra.mxu1 %vm265_vm1, %v47_v38 }
  0x4b   :  { %202 = vperm.xlu0 %1023, %v90_v45   ;;  %v70_v45 = vld [vmem:[%s1834_s1 + $0xf8] sm:$0xff] }
  0x4c   :  { %107 = vperm.xlu1 %1024, %v71_v39   ;;  %197 = vperm.xlu2 %1025, %v89_v59  }
  0x4d   :  { %963 = vmatmul.msk.f32.gmra.mxu0 %vm265_vm1, %v48_v40  ;;  %996 = vmatmul.msk.f32.gmra.mxu1 %vm265_vm1, %v48_v40  ;;  %v69_v40 = vld [vmem:[%s1834_s1 + $0xf0] sm:$0xff] }
  0x53   :  { %192 = vperm.xlu0 %1023, %v88_v48  }
  0x54   :  { %187 = vperm.xlu1 %1024, %v87_v46  }
  0x55   :  { %964 = vmatmul.msk.f32.gmra.mxu0 %vm265_vm1, %v49_v41  ;;  %997 = vmatmul.msk.f32.gmra.mxu1 %vm265_vm1, %v49_v41 }
  0x5d   :  { %965 = vmatmul.msk.f32.gmra.mxu0 %vm265_vm1, %v50_v42  ;;  %998 = vmatmul.msk.f32.gmra.mxu1 %vm265_vm1, %v50_v42 }
  0x5e   :  { %v168_v25 = vpop.permute.xlu2 %167 }
  0x65   :  { %966 = vmatmul.msk.f32.gmra.mxu0 %vm265_vm1, %v51_v43  ;;  %999 = vmatmul.msk.f32.gmra.mxu1 %vm265_vm1, %v51_v43 }
  0x66   :  { %v1394_v31 = vpop.permute.xlu2 %257 }
  0x6d   :  { %967 = vmatmul.msk.f32.gmra.mxu0 %vm265_vm1, %v52_v44  ;;  %1000 = vmatmul.msk.f32.gmra.mxu1 %vm265_vm1, %v52_v44 }
  0x6e   :  { %v158_v37 = vpop.permute.xlu2 %157 }
  0x75   :  { %968 = vmatmul.msk.f32.gmra.mxu0 %vm265_vm1, %v53_v47  ;;  %1001 = vmatmul.msk.f32.gmra.mxu1 %vm265_vm1, %v53_v47  ;;  %v183_v21 = vpop.permute.xlu0 %182 }
  0x76   :  { %v173_v20 = vpop.permute.xlu1 %172  ;;  %v1413_v46 = vpop.permute.xlu2 %242 }
  0x7d   :  { %969 = vmatmul.msk.f32.gmra.mxu0 %vm265_vm1, %v54_v49  ;;  %1002 = vmatmul.msk.f32.gmra.mxu1 %vm265_vm1, %v54_v49  ;;  %v178_v30 = vpop.permute.xlu0 %177 }
  0x7e   :  { %v1387_v26 = vpop.permute.xlu1 %262 }
  0x82   :  { %v1280_v50 = vpop.f32.mrf.mxu0  ;;  %v1282_v51 = vpop.f32.mrf.mxu1 }
  0x85   :  { %970 = vmatmul.msk.f32.gmra.mxu0 %vm265_vm1, %v55_v52  ;;  %1003 = vmatmul.msk.f32.gmra.mxu1 %vm265_vm1, %v55_v52  ;;  %v163_v36 = vpop.permute.xlu0 %162 }
  0x86   :  { %v1399_v35 = vpop.permute.xlu1 %252 }
  0x8a   :  { %v1289_v53 = vpop.f32.mrf.mxu0  ;;  %v1291_v54 = vpop.f32.mrf.mxu1 }
  0x8d   :  { %971 = vmatmul.msk.f32.gmra.mxu0 %vm265_vm1, %v56_v55  ;;  %1004 = vmatmul.msk.f32.gmra.mxu1 %vm265_vm1, %v56_v55  ;;  %v1408_v42 = vpop.permute.xlu0 %247 }
  0x8e   :  { %v153_v41 = vpop.permute.xlu1 %152 }
  0x92   :  { %v1298_v56 = vpop.f32.mrf.mxu0  ;;  %v1300_v57 = vpop.f32.mrf.mxu1 }
  0x95   :  { %972 = vmatmul.msk.f32.gmra.mxu0 %vm265_vm1, %v57_v58  ;;  %1005 = vmatmul.msk.f32.gmra.mxu1 %vm265_vm1, %v57_v58 }
  0x96   :  { %v1417_v59 = vpop.permute.xlu1 %237 }
  0x9a   :  { %v1310_v60 = vpop.f32.mrf.mxu0  ;;  %v1312_v61 = vpop.f32.mrf.mxu1 }
  0x9d   :  { %973 = vmatmul.msk.f32.gmra.mxu0 %vm265_vm1, %v58_v62  ;;  %1006 = vmatmul.msk.f32.gmra.mxu1 %vm265_vm1, %v58_v62  ;;  %v148_v62 = vpop.permute.xlu0 %147 }
  0xa2   :  { %v1319_v63 = vpop.f32.mrf.mxu0  ;;  %v1321_v0 = vpop.f32.mrf.mxu1 }
  0xa5   :  { %974 = vmatmul.msk.f32.gmra.mxu0 %vm265_vm1, %v59_v1  ;;  %1007 = vmatmul.msk.f32.gmra.mxu1 %vm265_vm1, %v59_v1 }
  0xaa   :  { %v1328_v2 = vpop.f32.mrf.mxu0  ;;  %v1330_v3 = vpop.f32.mrf.mxu1 }
  0xad   :  { %975 = vmatmul.msk.f32.gmra.mxu0 %vm265_vm1, %v60_v4  ;;  %1008 = vmatmul.msk.f32.gmra.mxu1 %vm265_vm1, %v60_v4 }
  0xb2   :  { %v1337_v5 = vpop.f32.mrf.mxu0  ;;  %v1339_v6 = vpop.f32.mrf.mxu1 }
  0xb5   :  { %976 = vmatmul.msk.f32.gmra.mxu0 %vm265_vm1, %v61_v7  ;;  %1009 = vmatmul.msk.f32.gmra.mxu1 %vm265_vm1, %v61_v7 }
  0xba   :  { %v1346_v8 = vpop.f32.mrf.mxu0  ;;  %v1348_v9 = vpop.f32.mrf.mxu1 }
  0xbd   :  { %977 = vmatmul.msk.f32.gmra.mxu0 %vm265_vm1, %v62_v10  ;;  %1010 = vmatmul.msk.f32.gmra.mxu1 %vm265_vm1, %v62_v10 }
  0xc2   :  { %v1355_v11 = vpop.f32.mrf.mxu0  ;;  %v1357_v12 = vpop.f32.mrf.mxu1 }
  0xc5   :  { %978 = vmatmul.msk.f32.gmra.mxu0 %vm265_vm1, %v63_v13  ;;  %1011 = vmatmul.msk.f32.gmra.mxu1 %vm265_vm1, %v63_v13 }
  0xca   :  { %v1364_v14 = vpop.f32.mrf.mxu0  ;;  %v1366_v15 = vpop.f32.mrf.mxu1 }
  0xcd   :  { %979 = vmatmul.msk.f32.gmra.mxu0 %vm265_vm1, %v64_v16  ;;  %1012 = vmatmul.msk.f32.gmra.mxu1 %vm265_vm1, %v64_v16 }
  0xd2   :  { %v1373_v17 = vpop.f32.mrf.mxu0  ;;  %v1375_v18 = vpop.f32.mrf.mxu1 }
  0xd5   :  { %980 = vmatmul.msk.f32.gmra.mxu0 %vm265_vm1, %v65_v19  ;;  %1013 = vmatmul.msk.f32.gmra.mxu1 %vm265_vm1, %v65_v19  ;;  %v143_v19 = vpop.permute.xlu2 %142 }
  0xda   :  { %v419_v22 = vpop.f32.mrf.mxu0  ;;  %v532_v23 = vpop.f32.mrf.mxu1 }
  0xdd   :  { %981 = vmatmul.msk.f32.gmra.mxu0 %vm265_vm1, %v66_v24  ;;  %1014 = vmatmul.msk.f32.gmra.mxu1 %vm265_vm1, %v66_v24 }
  0xe2   :  { %v422_v27 = vpop.f32.mrf.mxu0  ;;  %v535_v28 = vpop.f32.mrf.mxu1 }
  0xe3   :  { %v536_v24 = vadd.f32 %v535_v28, %v168_v25 }
  0xe5   :  { %982 = vmatmul.msk.f32.gmra.mxu0 %vm265_vm1, %v67_v29  ;;  %1015 = vmatmul.msk.f32.gmra.mxu1 %vm265_vm1, %v67_v29 }
  0xea   :  { %v425_v32 = vpop.f32.mrf.mxu0  ;;  %v538_v33 = vpop.f32.mrf.mxu1 }
  0xeb   :  { %v426_v1 = vadd.f32 %v425_v32, %v173_v20  ;;  %v539_v4 = vadd.f32 %v538_v33, %v173_v20  ;;  %v620_v20 = vmax.f32 %v536_v24, 0.0 }
  0xed   :  { %983 = vmatmul.msk.f32.gmra.mxu0 %vm265_vm1, %v68_v34  ;;  %1016 = vmatmul.msk.f32.gmra.mxu1 %vm265_vm1, %v68_v34  ;;  %v621_v29 = vmax.f32 %v426_v1, 0.0  ;;  %v138_v34 = vpop.permute.xlu1 %137 }
  0xf2   :  { %v428_v38 = vpop.f32.mrf.mxu0  ;;  %v541_v39 = vpop.f32.mrf.mxu1 }
  0xf3   :  { %v429_v49 = vadd.f32 %v428_v38, %v178_v30  ;;  %v542_v52 = vadd.f32 %v541_v39, %v178_v30  ;;  %v622_v30 = vmax.f32 %v539_v4, 0.0  ;;  %v420_v38 = vadd.f32 %v419_v22, %v163_v36 }
  0xf4   :  { %v533_v39 = vadd.f32 %v532_v23, %v163_v36  ;;  %v414_v22 = vadd.f32 %v1364_v14, %v153_v41  ;;  %v527_v23 = vadd.f32 %v1366_v15, %v153_v41  ;;  %v408_v15 = vadd.f32 %v1346_v8, %v143_v19 }
  0xf5   :  { %984 = vmatmul.msk.f32.gmra.mxu0 %vm265_vm1, %v69_v40  ;;  %1017 = vmatmul.msk.f32.gmra.mxu1 %vm265_vm1, %v69_v40  ;;  %v623_v7 = vmax.f32 %v429_v49, 0.0  ;;  %v624_v10 = vmax.f32 %v542_v52, 0.0  ;;  %v617_v28 = vmax.f32 %v420_v38, 0.0  ;;  %v1439_v52 = vpop.permute.xlu1 %222  ;;  %v521_v41 = vadd.f32 %v1348_v9, %v143_v19 }
  0xf7   :  { %v610_v24 = vmax.f32 %v521_v41, 0.0 }
  0xfa   :  { %v431_v43 = vpop.f32.mrf.mxu0  ;;  %v544_v44 = vpop.f32.mrf.mxu1 }
  0xfb   :  { %v432_v47 = vadd.f32 %v431_v43, %v183_v21  ;;  %v545_v48 = vadd.f32 %v544_v44, %v183_v21  ;;  %v423_v21 = vadd.f32 %v422_v27, %v168_v25  ;;  %v1427_v43 = vpop.permute.xlu0 %232  ;;  %v417_v27 = vadd.f32 %v1373_v17, %v158_v37 }
  0xfc   :  { %v530_v25 = vadd.f32 %v1375_v18, %v158_v37  ;;  %v618_v44 = vmax.f32 %v533_v39, 0.0  ;;  %v411_v18 = vadd.f32 %v1355_v11, %v148_v62  ;;  %v524_v37 = vadd.f32 %v1357_v12, %v148_v62 }
  0xfd   :  { %985 = vmatmul.msk.f32.gmra.mxu0 %vm265_vm1, %v70_v45  ;;  %1018 = vmatmul.msk.f32.gmra.mxu1 %vm265_vm1, %v70_v45  ;;  %v625_v55 = vmax.f32 %v432_v47, 0.0  ;;  %v626_v58 = vmax.f32 %v545_v48, 0.0  ;;  %v619_v32 = vmax.f32 %v423_v21, 0.0  ;;  %v1431_v45 = vpop.permute.xlu2 %227  ;;  %v615_v36 = vmax.f32 %v417_v27, 0.0  ;;  %v123_v11 = vpop.permute.xlu1 %122 }
  0xfe   :  { %v616_v47 = vmax.f32 %v530_v25, 0.0  ;;  %v611_v1 = vmax.f32 %v411_v18, 0.0  ;;  %v612_v4 = vmax.f32 %v524_v37, 0.0  ;;  %v405_v12 = vadd.f32 %v1337_v5, %v138_v34 }
  0xff   :  { %659 = vmatpush.xpose.msra.mxu2 %v625_v55  ;;  %679 = vmatpush.xpose.msra.mxu3 %v626_v58  ;;  %v613_v55 = vmax.f32 %v414_v22, 0.0  ;;  %v614_v58 = vmax.f32 %v527_v23, 0.0  ;;  %v518_v62 = vadd.f32 %v1339_v6, %v138_v34  ;;  %v609_v21 = vmax.f32 %v408_v15, 0.0 }
 0x100   :  { %v607_v19 = vmax.f32 %v405_v12, 0.0 }
 0x102   :  { %v1419_v13 = vpop.f32.mrf.mxu0  ;;  %v1421_v16 = vpop.f32.mrf.mxu1 }
 0x103   :  { %660 = vmatpush.xpose.msra.mxu2 %v623_v7  ;;  %680 = vmatpush.xpose.msra.mxu3 %v624_v10  ;;  %v133_v17 = vpop.permute.xlu0 %132 }
 0x104   :  { %v402_v8 = vadd.f32 %v1328_v2, %v133_v17  ;;  %v515_v9 = vadd.f32 %v1330_v3, %v133_v17  ;;  %v396_v2 = vadd.f32 %v1310_v60, %v123_v11  ;;  %v509_v3 = vadd.f32 %v1312_v61, %v123_v11 }
 0x105   :  { %v128_v14 = vpop.permute.xlu2 %127  ;;  %v1463_v27 = vpop.permute.xlu1 %207 }
 0x106   :  { %v399_v6 = vadd.f32 %v1319_v63, %v128_v14  ;;  %v512_v34 = vadd.f32 %v1321_v0, %v128_v14 }
 0x107   :  { %661 = vmatpush.xpose.msra.mxu2 %v621_v29  ;;  %681 = vmatpush.xpose.msra.mxu3 %v622_v30  ;;  %v608_v30 = vmax.f32 %v518_v62, 0.0 }
 0x10a   :  { %v1423_v33 = vpop.f32.mrf.mxu0  ;;  %v1425_v40 = vpop.f32.mrf.mxu1 }
 0x10b   :  { %662 = vmatpush.xpose.msra.mxu2 %v619_v32  ;;  %682 = vmatpush.xpose.msra.mxu3 %v620_v20  ;;  %v1451_v29 = vpop.permute.xlu0 %217  ;;  %v605_v32 = vmax.f32 %v402_v8, 0.0  ;;  %v606_v20 = vmax.f32 %v515_v9, 0.0 }
 0x10d   :  { %v1459_v5 = vpop.permute.xlu2 %212  ;;  %v108_v18 = vpop.permute.xlu1 %107 }
 0x10f   :  { %663 = vmatpush.xpose.msra.mxu2 %v617_v28  ;;  %683 = vmatpush.xpose.msra.mxu3 %v618_v44  ;;  %v603_v28 = vmax.f32 %v399_v6, 0.0  ;;  %v604_v44 = vmax.f32 %v512_v34, 0.0 }
 0x112   :  { %v1435_v48 = vpop.f32.mrf.mxu0  ;;  %v1437_v49 = vpop.f32.mrf.mxu1 }
 0x113   :  { %664 = vmatpush.xpose.msra.mxu2 %v615_v36  ;;  %684 = vmatpush.xpose.msra.mxu3 %v616_v47  ;;  %v118_v25 = vpop.permute.xlu0 %117  ;;  %v601_v36 = vmax.f32 %v396_v2, 0.0  ;;  %v602_v47 = vmax.f32 %v509_v3, 0.0 }
 0x114   :  { %v393_v63 = vadd.f32 %v1298_v56, %v118_v25  ;;  %v506_v0 = vadd.f32 %v1300_v57, %v118_v25  ;;  %v387_v56 = vadd.f32 %v1280_v50, %v108_v18  ;;  %v500_v57 = vadd.f32 %v1282_v51, %v108_v18 }
 0x115   :  { %v113_v17 = vpop.permute.xlu2 %112 }
 0x116   :  { %v390_v60 = vadd.f32 %v1289_v53, %v113_v17  ;;  %v503_v61 = vadd.f32 %v1291_v54, %v113_v17  ;;  %v599_v37 = vmax.f32 %v393_v63, 0.0  ;;  %v595_v53 = vmax.f32 %v387_v56, 0.0 }
 0x117   :  { %665 = vmatpush.xpose.msra.mxu2 %v613_v55  ;;  %685 = vmatpush.xpose.msra.mxu3 %v614_v58  ;;  %v600_v55 = vmax.f32 %v506_v0, 0.0 }
 0x118   :  { %v597_v15 = vmax.f32 %v390_v60, 0.0  ;;  %v598_v41 = vmax.f32 %v503_v61, 0.0 }
 0x11a   :  { %v1445_v7 = vpop.f32.mrf.mxu0  ;;  %v1447_v10 = vpop.f32.mrf.mxu1 }
 0x11b   :  { %666 = vmatpush.xpose.msra.mxu2 %v611_v1  ;;  %686 = vmatpush.xpose.msra.mxu3 %v612_v4  ;;  %v596_v1 = vmax.f32 %v500_v57, 0.0 }
 0x11f   :  { %667 = vmatpush.xpose.msra.mxu2 %v609_v21  ;;  %687 = vmatpush.xpose.msra.mxu3 %v610_v24 }
 0x122   :  { %v1455_v38 = vpop.f32.mrf.mxu0  ;;  %v1457_v39 = vpop.f32.mrf.mxu1 }
 0x123   :  { %668 = vmatpush.xpose.msra.mxu2 %v607_v19  ;;  %688 = vmatpush.xpose.msra.mxu3 %v608_v30 }
 0x127   :  { %669 = vmatpush.xpose.msra.mxu2 %v605_v32  ;;  %689 = vmatpush.xpose.msra.mxu3 %v606_v20 }
 0x12a   :  { %v1467_v22 = vpop.f32.mrf.mxu0  ;;  %v1469_v23 = vpop.f32.mrf.mxu1 }
 0x12b   :  { %670 = vmatpush.xpose.msra.mxu2 %v603_v28  ;;  %690 = vmatpush.xpose.msra.mxu3 %v604_v44 }
 0x12f   :  { %671 = vmatpush.xpose.msra.mxu2 %v601_v36  ;;  %691 = vmatpush.xpose.msra.mxu3 %v602_v47 }
 0x132   :  { %v1475_v58 = vpop.f32.mrf.mxu0  ;;  %v1477_v14 = vpop.f32.mrf.mxu1 }
 0x133   :  { %672 = vmatpush.xpose.msra.mxu2 %v599_v37  ;;  %692 = vmatpush.xpose.msra.mxu3 %v600_v55 }
 0x137   :  { %673 = vmatpush.xpose.msra.mxu2 %v597_v15  ;;  %693 = vmatpush.xpose.msra.mxu3 %v598_v41 }
 0x13a   :  { %v1481_v54 = vpop.f32.mrf.mxu0  ;;  %v1483_v4 = vpop.f32.mrf.mxu1 }
 0x13b   :  { %674 = vmatpush.xpose.msra.mxu2 %v595_v53  ;;  %694 = vmatpush.xpose.msra.mxu3 %v596_v1 }
 0x142   :  { %v458_v11 = vpop.f32.mrf.mxu0  ;;  %v571_v12 = vpop.f32.mrf.mxu1 }
 0x14a   :  { %v461_v62 = vpop.f32.mrf.mxu0  ;;  %v574_v21 = vpop.f32.mrf.mxu1 }
 0x14b   :  { %v575_v1 = vadd.f32 %v574_v21, %v1427_v43 }
 0x152   :  { %v464_v24 = vpop.f32.mrf.mxu0  ;;  %v577_v50 = vpop.f32.mrf.mxu1 }
 0x153   :  { %v578_v15 = vadd.f32 %v577_v50, %v1417_v59 }
 0x15a   :  { %v467_v8 = vpop.f32.mrf.mxu0  ;;  %v580_v51 = vpop.f32.mrf.mxu1 }
 0x15b   :  { %v581_v55 = vadd.f32 %v580_v51, %v1413_v46  ;;  %v646_v51 = vmax.f32 %v575_v1, 0.0  ;;  %v1639_v1 = vld [vmem:[%s1838_s5 + $0x68] sm:$0xff] }
 0x15d   :  { %v650_v53 = vmax.f32 %v581_v55, 0.0  ;;  %v1591_v55 = vld [vmem:[%s1836_s3 + $0x28] sm:$0xff] }
 0x162   :  { %v470_v9 = vpop.f32.mrf.mxu0  ;;  %v583_v19 = vpop.f32.mrf.mxu1 }
 0x163   :  { %v471_v61 = vadd.f32 %v470_v9, %v1408_v42 }
 0x165   :  { %v651_v56 = vmax.f32 %v471_v61, 0.0  ;;  %v1561_v61 = vld [vmem:[%s1836_s3 + $0x50] sm:$0xff] }
 0x16a   :  { %v473_v30 = vpop.f32.mrf.mxu0  ;;  %v586_v6 = vpop.f32.mrf.mxu1 }
 0x16b   :  { %v474_v36 = vadd.f32 %v473_v30, %v1399_v35  ;;  %v587_v47 = vadd.f32 %v586_v6, %v1399_v35  ;;  %v465_v35 = vadd.f32 %v464_v24, %v1417_v59  ;;  %v459_v24 = vadd.f32 %v458_v11, %v1431_v45 }
 0x16c   :  { %v572_v59 = vadd.f32 %v571_v12, %v1431_v45  ;;  %v453_v30 = vadd.f32 %v1475_v58, %v1451_v29  ;;  %v566_v45 = vadd.f32 %v1477_v14, %v1451_v29  ;;  %v447_v58 = vadd.f32 %v1455_v38, %v1463_v27 }
 0x16d   :  { %v653_v18 = vmax.f32 %v474_v36, 0.0  ;;  %v654_v37 = vmax.f32 %v587_v47, 0.0  ;;  %v647_v9 = vmax.f32 %v465_v35, 0.0  ;;  %v643_v21 = vmax.f32 %v459_v24, 0.0  ;;  %v1609_v35 = vld [vmem:[%s1836_s3 + $0x10] sm:$0xff] }
 0x16e   :  { %v640_v6 = vmax.f32 %v566_v45, 0.0  ;;  %v560_v29 = vadd.f32 %v1457_v39, %v1463_v27  ;;  %v1054_v24 = vmov 0.0   ;;  %v1707_v45 = vld [vmem:[%s1838_s5 + $0x18] sm:$0xff] }
 0x172   :  { %v476_v34 = vpop.f32.mrf.mxu0  ;;  %v589_v32 = vpop.f32.mrf.mxu1 }
 0x173   :  { %v477_v28 = vadd.f32 %v476_v34, %v1394_v31  ;;  %v590_v44 = vadd.f32 %v589_v32, %v1394_v31  ;;  %v468_v31 = vadd.f32 %v467_v8, %v1413_v46  ;;  %v648_v8 = vmax.f32 %v578_v15, 0.0  ;;  %v203_v34 = vpop.permute.xlu0 %202  ;;  %v1615_v15 = vld [vmem:[%s1836_s3 + $0x8] sm:$0xff] }
 0x174   :  { %v1053_v46 = vmov 0.00390625  }
 0x175   :  { %v655_v17 = vmax.f32 %v477_v28, 0.0  ;;  %v656_v60 = vmax.f32 %v590_v44, 0.0  ;;  %v649_v41 = vmax.f32 %v468_v31, 0.0  ;;  %675 = vmatmul.f32.vlgmr.msra.gmra.mxu2 %v1053_v46  ;;  %695 = vmatmul.f32.vlgmr.msra.gmra.mxu3 %v1053_v46  ;;  %v1585_v31 = vld [vmem:[%s1836_s3 + $0x30] sm:$0xff] }
 0x17a   :  { %v479_v20 = vpop.f32.mrf.mxu0  ;;  %v592_v2 = vpop.f32.mrf.mxu1 }
 0x17b   :  { %v480_v3 = vadd.f32 %v479_v20, %v1387_v26  ;;  %v593_v25 = vadd.f32 %v592_v2, %v1387_v26  ;;  %v584_v26 = vadd.f32 %v583_v19, %v1408_v42  ;;  %v462_v42 = vadd.f32 %v461_v62, %v1427_v43  ;;  %v198_v2 = vpop.permute.xlu2 %197  ;;  %v193_v39 = vpop.permute.xlu0 %192 }
 0x17c   :  { %v456_v43 = vadd.f32 %v1481_v54, %v1439_v52  ;;  %v569_v62 = vadd.f32 %v1483_v4, %v1439_v52  ;;  %v644_v19 = vmax.f32 %v572_v59, 0.0  ;;  %v450_v54 = vadd.f32 %v1467_v22, %v1459_v5  ;;  %v1659_v59 = vld [vmem:[%s1838_s5 + $0x58] sm:$0xff] }
 0x17d   :  { %v657_v63 = vmax.f32 %v480_v3, 0.0  ;;  %v658_v0 = vmax.f32 %v593_v25, 0.0  ;;  %v652_v57 = vmax.f32 %v584_v26, 0.0  ;;  %v645_v50 = vmax.f32 %v462_v42, 0.0  ;;  %v1567_v26 = vld [vmem:[%s1836_s3 + $0x48] sm:$0xff]  ;;  %v1633_v42 = vld [vmem:[%s1838_s5 + $0x70] sm:$0xff] }
 0x17e   :  { %v641_v11 = vmax.f32 %v456_v43, 0.0  ;;  %v642_v12 = vmax.f32 %v569_v62, 0.0  ;;  %v563_v52 = vadd.f32 %v1469_v23, %v1459_v5  ;;  %v639_v4 = vmax.f32 %v453_v30, 0.0  ;;  %v1677_v43 = vld [vmem:[%s1838_s5 + $0x40] sm:$0xff]  ;;  %v1683_v62 = vld [vmem:[%s1838_s5 + $0x38] sm:$0xff] }
 0x17f   :  { %699 = vmatpush.xpose.msrb.mxu2 %v657_v63  ;;  %719 = vmatpush.xpose.msrb.mxu3 %v658_v0  ;;  %v637_v14 = vmax.f32 %v450_v54, 0.0  ;;  %v444_v22 = vadd.f32 %v1445_v7, %v203_v34  ;;  %v557_v20 = vadd.f32 %v1447_v10, %v203_v34  ;;  %v635_v5 = vmax.f32 %v447_v58, 0.0  ;;  %v188_v63 = vpop.permute.xlu1 %187  ;;  %v1700_v30 = vld [vmem:[%s1838_s5 + $0x20] sm:$0xff]  ;;  %v803_v34 = vld [vmem:[%s1839_s6 + $0x70] sm:$0xff]  ;;  %v802_v58 = vld [vmem:[%s1839_s6 + $0x68] sm:$0xff] }
 0x180   :  { %v638_v32 = vmax.f32 %v563_v52, 0.0  ;;  %v636_v23 = vmax.f32 %v560_v29, 0.0  ;;  %v441_v3 = vadd.f32 %v1435_v48, %v198_v2  ;;  %v554_v38 = vadd.f32 %v1437_v49, %v198_v2  ;;  %v1724_v54 = vld [vmem:[%s1838_s5] sm:$0xff] }
 0x181   :  { %v633_v25 = vmax.f32 %v444_v22, 0.0  ;;  %v634_v28 = vmax.f32 %v557_v20, 0.0  ;;  %v438_v27 = vadd.f32 %v1423_v33, %v193_v39  ;;  %v551_v7 = vadd.f32 %v1425_v40, %v193_v39  ;;  %v1530_v33 = vld [vmem:[%s1836_s3 + $0x78] sm:$0xff]  ;;  %v1549_v40 = vld [vmem:[%s1836_s3 + $0x60] sm:$0xff]  ;;  %v799_v20 = vld [vmem:[%s1839_s6 + $0x50] sm:$0xff] }
 0x182   :  { %v631_v44 = vmax.f32 %v441_v3, 0.0  ;;  %v632_v10 = vmax.f32 %v554_v38, 0.0  ;;  %v435_v0 = vadd.f32 %v1419_v13, %v188_v63  ;;  %v548_v48 = vadd.f32 %v1421_v16, %v188_v63  ;;  %v1536_v13 = vld [vmem:[%s1836_s3 + $0x70] sm:$0xff]  ;;  %v1543_v16 = vld [vmem:[%s1836_s3 + $0x68] sm:$0xff]  ;;  %v801_v29 = vld [vmem:[%s1839_s6 + $0x60] sm:$0xff] }
 0x183   :  { %700 = vmatpush.xpose.msrb.mxu2 %v655_v17  ;;  %720 = vmatpush.xpose.msrb.mxu3 %v656_v60  ;;  %v629_v36 = vmax.f32 %v438_v27, 0.0  ;;  %v630_v49 = vmax.f32 %v551_v7, 0.0  ;;  %v1555_v60 = vld [vmem:[%s1836_s3 + $0x58] sm:$0xff]  ;;  %v795_v7 = vld [vmem:[%s1839_s6 + $0x30] sm:$0xff] }
 0x184   :  { %v627_v47 = vmax.f32 %v435_v0, 0.0  ;;  %v628_v17 = vmax.f32 %v548_v48, 0.0  ;;  %v796_v27 = vld [vmem:[%s1839_s6 + $0x38] sm:$0xff]  ;;  %v791_v48 = vld [vmem:[%s1839_s6 + $0x10] sm:$0xff] }
 0x185   :  { %v792_v63 = vld [vmem:[%s1839_s6 + $0x18] sm:$0xff] }
 0x187   :  { %701 = vmatpush.xpose.msrb.mxu2 %v653_v18  ;;  %721 = vmatpush.xpose.msrb.mxu3 %v654_v37  ;;  %v1573_v18 = vld [vmem:[%s1836_s3 + $0x40] sm:$0xff]  ;;  %v1579_v37 = vld [vmem:[%s1836_s3 + $0x38] sm:$0xff] }
 0x18b   :  { %702 = vmatpush.xpose.msrb.mxu2 %v651_v56  ;;  %722 = vmatpush.xpose.msrb.mxu3 %v652_v57  ;;  %v1597_v56 = vld [vmem:[%s1836_s3 + $0x20] sm:$0xff]  ;;  %v1603_v57 = vld [vmem:[%s1836_s3 + $0x18] sm:$0xff] }
 0x18f   :  { %703 = vmatpush.xpose.msrb.mxu2 %v649_v41  ;;  %723 = vmatpush.xpose.msrb.mxu3 %v650_v53  ;;  %v1622_v41 = vld [vmem:[%s1836_s3] sm:$0xff]  ;;  %v1627_v53 = vld [vmem:[%s1838_s5 + $0x78] sm:$0xff] }
 0x193   :  { %704 = vmatpush.xpose.msrb.mxu2 %v647_v9  ;;  %724 = vmatpush.xpose.msrb.mxu3 %v648_v8  ;;  %v1645_v9 = vld [vmem:[%s1838_s5 + $0x60] sm:$0xff]  ;;  %v34_v8 = vlaneseq }
 0x195   :  { %vm1650_vm2 = vcmp.lt.s32.totalorder %v34_v8, 256  ;;  %vm1822_vm4 = vcmp.lt.s32.totalorder %v34_v8, 128 }
 0x196   :  { %38 = vst.msk [vmem:[#allocation2] sm:$0x3] %vm1650_vm2, %v1054_v24 }
 0x197   :  { %705 = vmatpush.xpose.msrb.mxu2 %v645_v50  ;;  %725 = vmatpush.xpose.msrb.mxu3 %v646_v51  ;;  %v1665_v50 = vld [vmem:[%s1838_s5 + $0x50] sm:$0xff]  ;;  %v1671_v51 = vld [vmem:[%s1838_s5 + $0x48] sm:$0xff] }
 0x19b   :  { %706 = vmatpush.xpose.msrb.mxu2 %v643_v21  ;;  %726 = vmatpush.xpose.msrb.mxu3 %v644_v19  ;;  %v1688_v21 = vld [vmem:[%s1838_s5 + $0x30] sm:$0xff]  ;;  %v1694_v19 = vld [vmem:[%s1838_s5 + $0x28] sm:$0xff] }
 0x19d   :  { %v739_v3 = vld [vmem:[#allocation2] sm:$0x3] }
 0x19f   :  { %707 = vmatpush.xpose.msrb.mxu2 %v641_v11  ;;  %727 = vmatpush.xpose.msrb.mxu3 %v642_v12  ;;  %v1712_v11 = vld [vmem:[%s1838_s5 + $0x10] sm:$0xff]  ;;  %v1718_v12 = vld [vmem:[%s1838_s5 + $0x8] sm:$0xff] }
 0x1a3   :  { %708 = vmatpush.xpose.msrb.mxu2 %v639_v4  ;;  %728 = vmatpush.xpose.msrb.mxu3 %v640_v6  ;;  %v804_v6 = vld [vmem:[%s1839_s6 + $0x78] sm:$0xff] }
 0x1a7   :  { %709 = vmatpush.xpose.msrb.mxu2 %v637_v14  ;;  %729 = vmatpush.xpose.msrb.mxu3 %v638_v32  ;;  %v800_v14 = vld [vmem:[%s1839_s6 + $0x58] sm:$0xff] }
 0x1ab   :  { %710 = vmatpush.xpose.msrb.mxu2 %v635_v5  ;;  %730 = vmatpush.xpose.msrb.mxu3 %v636_v23  ;;  %v798_v23 = vld [vmem:[%s1839_s6 + $0x48] sm:$0xff] }
 0x1af   :  { %711 = vmatpush.xpose.msrb.mxu2 %v633_v25  ;;  %731 = vmatpush.xpose.msrb.mxu3 %v634_v28  ;;  %v797_v25 = vld [vmem:[%s1839_s6 + $0x40] sm:$0xff] }
 0x1b3   :  { %712 = vmatpush.xpose.msrb.mxu2 %v631_v44  ;;  %732 = vmatpush.xpose.msrb.mxu3 %v632_v10  ;;  %v794_v44 = vld [vmem:[%s1839_s6 + $0x28] sm:$0xff]  ;;  %v793_v10 = vld [vmem:[%s1839_s6 + $0x20] sm:$0xff] }
 0x1b7   :  { %713 = vmatpush.xpose.msrb.mxu2 %v629_v36  ;;  %733 = vmatpush.xpose.msrb.mxu3 %v630_v49  ;;  %v790_v36 = vld [vmem:[%s1839_s6 + $0x8] sm:$0xff]  ;;  %v789_v49 = vld [vmem:[%s1839_s6] sm:$0xff] }
 0x1bb   :  { %714 = vmatpush.xpose.msrb.mxu2 %v627_v47  ;;  %734 = vmatpush.xpose.msrb.mxu3 %v628_v17  ;;  %v772_v47 = vld [vmem:[%s1837_s4] sm:$0x1] }
 0x1be   :  { %715 = vmatmul.f32.vlgmr.msrb.gmra.mxu2 %v1053_v46  ;;  %735 = vmatmul.f32.vlgmr.msrb.gmra.mxu3 %v1053_v46 }
 0x1bf   :  { %806 = vmatpush.msra.mxu2 %v1530_v33  ;;  %827 = vmatpush.msra.mxu3 %v804_v6 }
 0x1c1   :  { %807 = vmatpush.msra.mxu2 %v1536_v13  ;;  %828 = vmatpush.msra.mxu3 %v803_v34 }
 0x1c3   :  { %808 = vmatpush.msra.mxu2 %v1543_v16  ;;  %829 = vmatpush.msra.mxu3 %v802_v58 }
 0x1c5   :  { %809 = vmatpush.msra.mxu2 %v1549_v40  ;;  %830 = vmatpush.msra.mxu3 %v801_v29 }
 0x1c7   :  { %810 = vmatpush.msra.mxu2 %v1555_v60  ;;  %831 = vmatpush.msra.mxu3 %v800_v14 }
 0x1c9   :  { %811 = vmatpush.msra.mxu2 %v1561_v61  ;;  %832 = vmatpush.msra.mxu3 %v799_v20 }
 0x1cb   :  { %812 = vmatpush.msra.mxu2 %v1567_v26  ;;  %833 = vmatpush.msra.mxu3 %v798_v23 }
 0x1cd   :  { %813 = vmatpush.msra.mxu2 %v1573_v18  ;;  %834 = vmatpush.msra.mxu3 %v797_v25 }
 0x1cf   :  { %814 = vmatpush.msra.mxu2 %v1579_v37  ;;  %835 = vmatpush.msra.mxu3 %v796_v27 }
 0x1d1   :  { %815 = vmatpush.msra.mxu2 %v1585_v31  ;;  %836 = vmatpush.msra.mxu3 %v795_v7 }
 0x1d3   :  { %816 = vmatpush.msra.mxu2 %v1591_v55  ;;  %837 = vmatpush.msra.mxu3 %v794_v44 }
 0x1d5   :  { %817 = vmatpush.msra.mxu2 %v1597_v56  ;;  %838 = vmatpush.msra.mxu3 %v793_v10 }
 0x1d7   :  { %818 = vmatpush.msra.mxu2 %v1603_v57  ;;  %839 = vmatpush.msra.mxu3 %v792_v63 }
 0x1d9   :  { %819 = vmatpush.msra.mxu2 %v1609_v35  ;;  %840 = vmatpush.msra.mxu3 %v791_v48 }
 0x1db   :  { %820 = vmatpush.msra.mxu2 %v1615_v15  ;;  %841 = vmatpush.msra.mxu3 %v790_v36 }
 0x1dd   :  { %821 = vmatpush.msra.mxu2 %v1622_v41  ;;  %842 = vmatpush.msra.mxu3 %v789_v49 }
 0x1df   :  { %847 = vmatpush.msrb.mxu2 %v1627_v53  ;;  %874 = vmatpush.msrb.mxu3 %v1530_v33 }
 0x1e1   :  { %848 = vmatpush.msrb.mxu2 %v1633_v42  ;;  %875 = vmatpush.msrb.mxu3 %v1536_v13 }
 0x1e3   :  { %849 = vmatpush.msrb.mxu2 %v1639_v1  ;;  %876 = vmatpush.msrb.mxu3 %v1543_v16 }
 0x1e5   :  { %850 = vmatpush.msrb.mxu2 %v1645_v9  ;;  %877 = vmatpush.msrb.mxu3 %v1549_v40 }
 0x1e7   :  { %851 = vmatpush.msrb.mxu2 %v1659_v59  ;;  %878 = vmatpush.msrb.mxu3 %v1555_v60  ;;  %v805_v60 = vld [vmem:[%s1840_s7] sm:$0x1] }
 0x1e9   :  { %852 = vmatpush.msrb.mxu2 %v1665_v50  ;;  %879 = vmatpush.msrb.mxu3 %v1561_v61 }
 0x1eb   :  { %853 = vmatpush.msrb.mxu2 %v1671_v51  ;;  %880 = vmatpush.msrb.mxu3 %v1567_v26 }
 0x1ed   :  { %854 = vmatpush.msrb.mxu2 %v1677_v43  ;;  %881 = vmatpush.msrb.mxu3 %v1573_v18 }
 0x1ef   :  { %855 = vmatpush.msrb.mxu2 %v1683_v62  ;;  %882 = vmatpush.msrb.mxu3 %v1579_v37 }
 0x1f1   :  { %856 = vmatpush.msrb.mxu2 %v1688_v21  ;;  %883 = vmatpush.msrb.mxu3 %v1585_v31 }
 0x1f3   :  { %857 = vmatpush.msrb.mxu2 %v1694_v19  ;;  %884 = vmatpush.msrb.mxu3 %v1591_v55 }
 0x1f5   :  { %858 = vmatpush.msrb.mxu2 %v1700_v30  ;;  %885 = vmatpush.msrb.mxu3 %v1597_v56 }
 0x1f7   :  { %859 = vmatpush.msrb.mxu2 %v1707_v45  ;;  %886 = vmatpush.msrb.mxu3 %v1603_v57 }
 0x1f8   :  { %v676_v52 = vpop.f32.mrf.mxu2  ;;  %v696_v4 = vpop.f32.mrf.mxu3 }
 0x1f9   :  { %860 = vmatpush.msrb.mxu2 %v1712_v11  ;;  %v697_v2 = vadd.f32 %v696_v4, %v676_v52  ;;  %887 = vmatpush.msrb.mxu3 %v1609_v35 }
 0x1fb   :  { %861 = vmatpush.msrb.mxu2 %v1718_v12  ;;  %888 = vmatpush.msrb.mxu3 %v1615_v15 }
 0x1fd   :  { %862 = vmatpush.msrb.mxu2 %v1724_v54  ;;  %889 = vmatpush.msrb.mxu3 %v1622_v41 }
 0x241   :  { %v716_v32 = vpop.f32.mrf.mxu2  ;;  %v736_v22 = vpop.f32.mrf.mxu3 }
 0x242   :  { %v737_v5 = vadd.f32 %v736_v22, %v716_v32 }
 0x244   :  { %v742_v38 = vrot.slane %v737_v5, 7 }
 0x246   :  { %v744_v28 = vsel %vm743_vm3, %v697_v2, %v742_v38 }
 0x247   :  { %v746_v39 = vadd.f32 %v744_v28, %v739_v3 }
 0x249   :  { %751 = vst.msk [vmem:[#allocation2] sm:$0x3] %vm1650_vm2, %v746_v39 }
 0x250   :  { %v1769_v0 = vld [vmem:[#allocation2] sm:$0x3] }
 0x251   :  { %822 = vmatmul.f32.vlgmr.msra.gmra.mxu2 %v1769_v0  ;;  %v872_v16 = vperm.slane %v1769_v0, 1 }
 0x252   :  { %895 = vmatpush.msra.mxu2 %v804_v6 }
 0x254   :  { %896 = vmatpush.msra.mxu2 %v803_v34 }
 0x256   :  { %897 = vmatpush.msra.mxu2 %v802_v58 }
 0x258   :  { %898 = vmatpush.msra.mxu2 %v801_v29 }
 0x259   :  { %863 = vmatmul.f32.vlgmr.msrb.gmra.mxu2 %v1769_v0 }
 0x25a   :  { %899 = vmatpush.msra.mxu2 %v800_v14 }
 0x25c   :  { %900 = vmatpush.msra.mxu2 %v799_v20 }
 0x25e   :  { %901 = vmatpush.msra.mxu2 %v798_v23 }
 0x260   :  { %902 = vmatpush.msra.mxu2 %v797_v25 }
 0x262   :  { %903 = vmatpush.msra.mxu2 %v796_v27 }
 0x264   :  { %904 = vmatpush.msra.mxu2 %v795_v7 }
 0x266   :  { %905 = vmatpush.msra.mxu2 %v794_v44 }
 0x268   :  { %906 = vmatpush.msra.mxu2 %v793_v10 }
 0x26a   :  { %907 = vmatpush.msra.mxu2 %v792_v63 }
 0x26c   :  { %908 = vmatpush.msra.mxu2 %v791_v48 }
 0x26e   :  { %909 = vmatpush.msra.mxu2 %v790_v36 }
 0x270   :  { %910 = vmatpush.msra.mxu2 %v789_v49 }
 0x2d4   :  { %v823_v17 = vpop.f32.mrf.mxu2 }
 0x2d5   :  { %v824_v33 = vadd.f32 %v823_v17, %v772_v47 }
 0x2d7   :  { %v826_v13 = vmax.f32 %v824_v33, 0.0 }
 0x2d9   :  { %843 = vmatmul.f32.vlgmr.msra.gmra.mxu3 %v826_v13 }
 0x2da   :  { %915 = vmatpush.msra.mxu3 %v1627_v53 }
 0x2dc   :  { %916 = vmatpush.msra.mxu3 %v1633_v42  ;;  %v864_v40 = vpop.f32.mrf.mxu2 }
 0x2de   :  { %917 = vmatpush.msra.mxu3 %v1639_v1 }
 0x2e0   :  { %918 = vmatpush.msra.mxu3 %v1645_v9 }
 0x2e1   :  { %890 = vmatmul.f32.vlgmr.msrb.gmra.mxu3 %v872_v16 }
 0x2e2   :  { %919 = vmatpush.msra.mxu3 %v1659_v59 }
 0x2e4   :  { %920 = vmatpush.msra.mxu3 %v1665_v50 }
 0x2e6   :  { %921 = vmatpush.msra.mxu3 %v1671_v51 }
 0x2e8   :  { %922 = vmatpush.msra.mxu3 %v1677_v43 }
 0x2ea   :  { %923 = vmatpush.msra.mxu3 %v1683_v62 }
 0x2ec   :  { %924 = vmatpush.msra.mxu3 %v1688_v21 }
 0x2ee   :  { %925 = vmatpush.msra.mxu3 %v1694_v19 }
 0x2f0   :  { %926 = vmatpush.msra.mxu3 %v1700_v30 }
 0x2f2   :  { %927 = vmatpush.msra.mxu3 %v1707_v45 }
 0x2f4   :  { %928 = vmatpush.msra.mxu3 %v1712_v11 }
 0x2f6   :  { %929 = vmatpush.msra.mxu3 %v1718_v12 }
 0x2f8   :  { %930 = vmatpush.msra.mxu3 %v1724_v54 }
 0x2f9   :  { %931 = vmatmul.f32.vlgmr.msra.gmra.mxu3 %v872_v16 }
 0x35c   :  { %v844_v61 = vpop.f32.mrf.mxu3 }
 0x35d   :  { %v865_v26 = vadd.f32 %v864_v40, %v844_v61 }
 0x35f   :  { %v867_v37 = vadd.f32 %v865_v26, %v805_v60 }
 0x361   :  { %870 = vst.msk [vmem:[#allocation3] sm:$0x1] %vm1822_vm4, %v867_v37 }
 0x364   :  { %v891_v31 = vpop.f32.mrf.mxu3 }
 0x365   :  { %v892_v55 = vadd.f32 %v891_v31, %v772_v47 }
 0x367   :  { %v894_v56 = vmax.f32 %v892_v55, 0.0 }
 0x369   :  { %911 = vmatmul.f32.vlgmr.msra.gmra.mxu2 %v894_v56 }
 0x37c   :  { %v932_v57 = vpop.f32.mrf.mxu3 }
 0x3ec   :  { %v912_v35 = vpop.f32.mrf.mxu2 }
 0x3ed   :  { %v933_v15 = vadd.f32 %v932_v57, %v912_v35 }
 0x3ef   :  { %v935_v41 = vadd.f32 %v933_v15, %v805_v60 }
 0x3f1   :  { %936 = vst.msk [vmem:[#allocation3 + $0x1] sm:$0x1] %vm1822_vm4, %v935_v41 }
 0x3f2   :  { %947 = dma.vmem_to_hbm [thread:$0]  %s943_s15, 32, %s945_s0, [#allocation4]  }
 0x3f3   :  { %1050 = dma.done.wait [#allocation4], 32  }
 0x3f4   :  { %1051 = vsyncadd [#allocation4], 4294967264 }
 0x3f5   :  { %952 = vsyncpa [#allocation4], 1 }

</bundles_post_ra>
